<compile_context>
chip_gen: v5e
topology: v5e:2x2
jax: 0.10.0
libtpu: 0.0.40
codegen_flags: <defaults>
</compile_context>

<pallas_src>
import functools

import jax
import jax.numpy as jnp
from jax.experimental import pallas as pl
from jax.experimental.pallas import tpu as pltpu


def _round_up(x, m):
    return (x + m - 1) // m * m


# ----------------------------- Pallas kernel -------------------------------

def _sepconv_kernel(x_ref, w_ref, s_ref, b_ref, o_ref):
    # x_ref: (1, KKC_pad, L)  bf16  -- im2col patches of one image
    # w_ref: (C_out, KKC_pad) bf16  -- KxK conv folded with the 1x1 conv
    # s_ref: (C_out, 1)       f32   -- BatchNorm scale (f32 epilogue)
    # b_ref: (C_out, 1)       f32   -- total bias (conv1+conv2+BN shift)
    # o_ref: (1, C_out, L)    f32   -- lane-dense output
    acc = jnp.dot(w_ref[...], x_ref[0], preferred_element_type=jnp.float32)
    o_ref[0] = jnp.maximum(acc * s_ref[...] + b_ref[...], 0.0).astype(o_ref.dtype)


# ------------------------------ host wrapper -------------------------------

def sep_conv(x, w1, b1, w2, b2, gamma, beta, running_mean, running_var, *,
             padding, eps=1e-5):
    """SepConv forward. x: (N, C_in, H, W) NCHW. Returns (N, C_out, H1, W1)."""
    N, C_in, H, W = x.shape
    C_mid, _, K, _ = w1.shape            # conv1: C_in -> C_in (C_mid == C_in)
    C_out = w2.shape[0]
    H1 = H + 2 * padding - K + 1         # stride-1 conv output spatial dims
    W1 = W + 2 * padding - K + 1
    KKC = K * K * C_in
    KKC_pad = _round_up(KKC, 16)         # bf16 sublane packing
    L = _round_up(H1 * W1, 128)          # lane-dense -> unmasked full-lane stores

    # ---- fold the 1x1 conv into the KxK conv (pure parameter algebra) ----
    w2m = w2.reshape(C_out, C_mid).astype(jnp.float32)
    w_fused = jnp.einsum("om,mckl->ockl", w2m, w1.astype(jnp.float32))
    b_conv = w2m @ b1.astype(jnp.float32) + b2.astype(jnp.float32)

    # eval-mode BatchNorm kept in the f32 epilogue (not baked into bf16 weights)
    bn_scale = gamma / jnp.sqrt(running_var + eps)
    bn_shift = beta - running_mean * bn_scale
    bias_tot = bn_scale * b_conv + bn_shift

    # weight matrix: (C_out, K*K*C_in), tap-major (kh, kw, c), zero-padded cols
    w_mat = jnp.transpose(w_fused, (0, 2, 3, 1)).reshape(C_out, KKC)
    w_mat = jnp.pad(w_mat, ((0, 0), (0, KKC_pad - KKC))).astype(jnp.bfloat16)

    # ---- host-side im2col (single fused XLA pass under jit) ----
    xp = jnp.pad(x, ((0, 0), (0, 0), (padding, padding), (padding, padding)))
    taps = [xp[:, :, kh:kh + H1, kw:kw + W1]
            for kh in range(K) for kw in range(K)]
    patches = jnp.stack(taps, axis=1).reshape(N, KKC, H1 * W1)
    patches = jnp.pad(patches, ((0, 0), (0, KKC_pad - KKC), (0, L - H1 * W1)))
    patches = patches.astype(jnp.bfloat16)

    scale_col = bn_scale.reshape(C_out, 1).astype(jnp.float32)
    bias_col = bias_tot.reshape(C_out, 1).astype(jnp.float32)

    cost = pl.CostEstimate(
        flops=2 * N * C_out * C_in * K * K * H1 * W1,
        transcendentals=0,
        bytes_accessed=(patches.size * 2 + w_mat.size * 2
                        + (scale_col.size + bias_col.size) * 4
                        + N * C_out * L * 4),
    )

    out = pl.pallas_call(
        _sepconv_kernel,
        out_shape=jax.ShapeDtypeStruct((N, C_out, L), jnp.float32),
        grid_spec=pltpu.PrefetchScalarGridSpec(
            num_scalar_prefetch=0,
            grid=(N,),
            in_specs=[
                pl.BlockSpec((1, KKC_pad, L), lambda n: (n, 0, 0)),
                pl.BlockSpec((C_out, KKC_pad), lambda n: (0, 0)),
                pl.BlockSpec((C_out, 1), lambda n: (0, 0)),
                pl.BlockSpec((C_out, 1), lambda n: (0, 0)),
            ],
            out_specs=pl.BlockSpec((1, C_out, L), lambda n: (n, 0, 0)),
        ),
        compiler_params=pltpu.CompilerParams(
            dimension_semantics=("parallel",)),
        cost_estimate=cost,
    )(patches, w_mat, scale_col, bias_col)

    # drop lane padding and restore NCHW
    return out[:, :, :H1 * W1].reshape(N, C_out, H1, W1)


# -------------------------- pure-JAX reference ------------------------------

def _reference(x, w1, b1, w2, b2, gamma, beta, rmean, rvar, padding, eps=1e-5):
    dn = ("NCHW", "OIHW", "NCHW")
    y = jax.lax.conv_general_dilated(x, w1, window_strides=(1, 1),
                                     padding=[(padding, padding)] * 2,
                                     dimension_numbers=dn)
    y = y + b1[None, :, None, None]
    y = jax.lax.conv_general_dilated(y, w2, window_strides=(1, 1),
                                     padding="VALID", dimension_numbers=dn)
    y = y + b2[None, :, None, None]
    scale = gamma / jnp.sqrt(rvar + eps)
    shift = beta - rmean * scale
    y = y * scale[None, :, None, None] + shift[None, :, None, None]
    return jnp.maximum(y, 0.0)


if __name__ == "__main__":
    key = jax.random.PRNGKey(0)
    ks = jax.random.split(key, 9)
    N, C_in, C_out, H, W, K, padding = 2, 4, 8, 16, 16, 3, 1
    # NOTE: SepConv's `stride` ctor arg is never forwarded to its convs in the
    # PyTorch module, so the forward pass is stride-1; it is ignored here too.

    x = jax.random.normal(ks[0], (N, C_in, H, W), jnp.float32)
    w1 = 0.1 * jax.random.normal(ks[1], (C_in, C_in, K, K), jnp.float32)
    b1 = 0.1 * jax.random.normal(ks[2], (C_in,), jnp.float32)
    w2 = 0.1 * jax.random.normal(ks[3], (C_out, C_in, 1, 1), jnp.float32)
    b2 = 0.1 * jax.random.normal(ks[4], (C_out,), jnp.float32)
    gamma = 1.0 + 0.1 * jax.random.normal(ks[5], (C_out,), jnp.float32)
    beta = 0.1 * jax.random.normal(ks[6], (C_out,), jnp.float32)
    rmean = 0.1 * jax.random.normal(ks[7], (C_out,), jnp.float32)
    rvar = jax.random.uniform(ks[8], (C_out,), jnp.float32, minval=0.5, maxval=1.5)

    fn = jax.jit(functools.partial(sep_conv, padding=padding))
    out = fn(x, w1, b1, w2, b2, gamma, beta, rmean, rvar)
    jax.block_until_ready(out)

    ref = _reference(x, w1, b1, w2, b2, gamma, beta, rmean, rvar, padding)
    assert out.shape == ref.shape == (N, C_out, H, W), out.shape
    max_err = float(jnp.max(jnp.abs(out - ref)))
    assert jnp.allclose(out, ref, atol=2e-2, rtol=2e-2), f"mismatch, max err {max_err}"

    print("KERNEL_OK")
</pallas_src>

<mosaic_0001>
module attributes {stable_mosaic.version = 11 : i64} {
  func.func @_sepconv_kernel(%arg0: i32, %arg1: memref<1x48x256xbf16, #tpu.memory_space<vmem>>, %arg2: memref<8x48xbf16, #tpu.memory_space<vmem>>, %arg3: memref<8x1xf32, #tpu.memory_space<vmem>>, %arg4: memref<8x1xf32, #tpu.memory_space<vmem>>, %arg5: memref<1x8x256xf32, #tpu.memory_space<vmem>>) attributes {dimension_semantics = [#tpu.dimension_semantics<parallel>], iteration_bounds = array<i64: 2>, scalar_prefetch = 0 : i64, scratch_operands = 0 : i64, tpu.core_type = #tpu.core_type<tc>, window_params = [{transform_indices = @transform_0, window_bounds = array<i64: 1, 48, 256>}, {pipeline_mode = #tpu.pipeline_mode<synchronous>, transform_indices = @transform_1, window_bounds = array<i64: 8, 48>}, {pipeline_mode = #tpu.pipeline_mode<synchronous>, transform_indices = @transform_2, window_bounds = array<i64: 8, 1>}, {pipeline_mode = #tpu.pipeline_mode<synchronous>, transform_indices = @transform_3, window_bounds = array<i64: 8, 1>}, {transform_indices = @transform_4, window_bounds = array<i64: 1, 8, 256>}]} {
    %c0 = arith.constant 0 : index
    %c0_0 = arith.constant 0 : index
    %0 = vector.load %arg2[%c0, %c0_0] : memref<8x48xbf16, #tpu.memory_space<vmem>>, vector<8x48xbf16>
    %c0_1 = arith.constant 0 : index
    %c0_2 = arith.constant 0 : index
    %c0_3 = arith.constant 0 : index
    %1 = vector.load %arg1[%c0_1, %c0_2, %c0_3] : memref<1x48x256xbf16, #tpu.memory_space<vmem>>, vector<1x48x256xbf16>
    %2 = vector.shape_cast %1 : vector<1x48x256xbf16> to vector<48x256xbf16>
    %cst = arith.constant dense<0.000000e+00> : vector<8x256xf32>
    %3 = tpu.matmul %0, %2, %cst {dimension_numbers = #tpu.dot_dimension_numbers<[1], [0], [0], [1], [0, 0, 1, 1], [], []>} : vector<8x48xbf16>, vector<48x256xbf16>, vector<8x256xf32> -> vector<8x256xf32>
    %c0_4 = arith.constant 0 : index
    %c0_5 = arith.constant 0 : index
    %4 = vector.load %arg3[%c0_4, %c0_5] : memref<8x1xf32, #tpu.memory_space<vmem>>, vector<8x1xf32>
    %5 = vector.broadcast %4 : vector<8x1xf32> to vector<8x256xf32>
    %6 = arith.mulf %3, %5 : vector<8x256xf32>
    %c0_6 = arith.constant 0 : index
    %c0_7 = arith.constant 0 : index
    %7 = vector.load %arg4[%c0_6, %c0_7] : memref<8x1xf32, #tpu.memory_space<vmem>>, vector<8x1xf32>
    %8 = vector.broadcast %7 : vector<8x1xf32> to vector<8x256xf32>
    %9 = arith.addf %6, %8 : vector<8x256xf32>
    %cst_8 = arith.constant 0.000000e+00 : f32
    %10 = vector.broadcast %cst_8 : f32 to vector<8x256xf32>
    %11 = arith.maximumf %9, %10 : vector<8x256xf32>
    %c0_9 = arith.constant 0 : index
    %c0_10 = arith.constant 0 : index
    %c0_11 = arith.constant 0 : index
    %12 = vector.load %arg5[%c0_9, %c0_10, %c0_11] : memref<1x8x256xf32, #tpu.memory_space<vmem>>, vector<1x8x256xf32>
    %13 = vector.shape_cast %12 : vector<1x8x256xf32> to vector<8x256xf32>
    %14 = vector.shape_cast %11 : vector<8x256xf32> to vector<1x8x256xf32>
    tpu.vector_store %arg5[%c0_9, %c0_10, %c0_11], %14 {strides = array<i32>} : memref<1x8x256xf32, #tpu.memory_space<vmem>>, vector<1x8x256xf32>,
    return
  }
  func.func @transform_0(%arg0: i32) -> (i32, i32, i32) {
    %c0_i32 = arith.constant 0 : i32
    %c0_i32_0 = arith.constant 0 : i32
    %c0_i32_1 = arith.constant 0 : i32
    return %arg0, %c0_i32, %c0_i32_0 : i32, i32, i32
  }
  func.func @transform_1(%arg0: i32) -> (i32, i32) {
    %c0_i32 = arith.constant 0 : i32
    %c0_i32_0 = arith.constant 0 : i32
    %c0_i32_1 = arith.constant 0 : i32
    return %c0_i32, %c0_i32_0 : i32, i32
  }
  func.func @transform_2(%arg0: i32) -> (i32, i32) {
    %c0_i32 = arith.constant 0 : i32
    %c0_i32_0 = arith.constant 0 : i32
    %c0_i32_1 = arith.constant 0 : i32
    return %c0_i32, %c0_i32_0 : i32, i32
  }
  func.func @transform_3(%arg0: i32) -> (i32, i32) {
    %c0_i32 = arith.constant 0 : i32
    %c0_i32_0 = arith.constant 0 : i32
    %c0_i32_1 = arith.constant 0 : i32
    return %c0_i32, %c0_i32_0 : i32, i32
  }
  func.func @transform_4(%arg0: i32) -> (i32, i32, i32) {
    %c0_i32 = arith.constant 0 : i32
    %c0_i32_0 = arith.constant 0 : i32
    %c0_i32_1 = arith.constant 0 : i32
    return %arg0, %c0_i32, %c0_i32_0 : i32, i32, i32
  }
}

</mosaic_0001>

<bundles_post_ra>
// kernel: sep_conv.1
= control target key start
LH: loop header
LB: loop body
LE: loop exit
PB: predicated region body
PF: predicated region fallthrough
CT: control target
= control target key end

     0   :  { %s429_s15 = smov 0   ;;  %s459_s0 = inlined_call_operand.vmem [shape: bf16[2,48,256], index: 0, kind: input, shape index: {}]   ;;  %s460_s1 = inlined_call_operand.vmem [shape: bf16[8,48], index: 1, kind: input, shape index: {}]   ;;  %s461_s2 = inlined_call_operand.vmem [shape: f32[8,1], index: 2, kind: input, shape index: {}]   ;;  %s462_s3 = inlined_call_operand.vmem [shape: f32[8,1], index: 3, kind: input, shape index: {}]   ;;  %s463_s4 = inlined_call_operand.vmem [shape: f32[2,8,256], index: 4, kind: output, shape index: {}]  }
   0x1 LB: > { %s341_s16 = sadd.s32 4294967295, %s401_s15   ;;  %p345_p0 = scmp.ge.s32.totalorder %s401_s15, 1  ;;  %s401_s15 = sphi %s429_s15, %s14_s15  }
   0x2   : > { %p162_p1 = scmp.lt.s32.totalorder %s401_s15, 3 }
   0x4   : > { %p163_p2 = pnand %p345_p0, %p162_p1 }
   0x5   : > { %p188_p3 = scmp.lt.s32.totalorder (!%p163_p2), %s341_s16, 1 }
   0x6   : > { %166 = sbr.rel (%p163_p2) target bundleno = 164 (0xa4), region = 36 }
   0xb   : > { %v266_v0 = vld [vmem:[%s461_s2] sm:$0xff]  ;;  %v403_v1 = vmov 0   ;;  %s465_s16 = smov (!%p188_p3, %s341_s16), 1  ;;  %vm236_vm0 = vcmask 392192  }
   0xc   : > { %394 = vset.pattern.permute.xlu0 %v403_v1  ;;  %s384_s19 = smul.u32 48, %s465_s16  ;;  %v274_v2 = vld [vmem:[%s462_s3] sm:$0xff]  ;;  %s377_s27 = sshll.u32 %s465_s16, 4 }
   0xd   : > { %269 = vperm.xlu0 %394, %v266_v0   ;;  %v199_v21 = vld [vmem:[%s460_s1] sm:$0xf]  ;;  %s197_s30 = scalar_lea.vmem %s463_s4, %s377_s27 }
   0xe   : > { %s192_s22 = scalar_lea.vmem %s459_s0, %s384_s19 }
   0xf   : > { %v367_v3 = vld [vmem:[%s192_s22 + $0x20] sm:$0xf]  ;;  %v383_v4 = vld [vmem:[%s192_s22 + $0x24] sm:$0xf0]  ;;  %v382_v5 = vld [vmem:[%s192_s22 + $0x24] sm:$0xf] }
  0x10   : > { %v368_v6 = vor.u32 %v383_v4, %v367_v3  ;;  %v369_v7 = vld [vmem:[%s192_s22 + $0x28] sm:$0xf0]  ;;  %v359_v8 = vld [vmem:[%s192_s22 + $0x10] sm:$0xf]  ;;  %v381_v9 = vld [vmem:[%s192_s22 + $0x14] sm:$0xf0] }
  0x11   : > { %v372_v10 = vor.u32 %v382_v5, %v369_v7  ;;  %v380_v11 = vld [vmem:[%s192_s22 + $0x14] sm:$0xf]  ;;  %v361_v12 = vld [vmem:[%s192_s22 + $0x18] sm:$0xf0]  ;;  %v360_v13 = vor.u32 %v381_v9, %v359_v8  ;;  %v351_v15 = vld [vmem:[%s192_s22] sm:$0xf] }
  0x12   : > { %245 = vmatpush.bf16.msra.mxu0 %v368_v6  ;;  %v364_v14 = vor.u32 %v380_v11, %v361_v12  ;;  %v379_v16 = vld [vmem:[%s192_s22 + $0x4] sm:$0xf0]  ;;  %v378_v17 = vld [vmem:[%s192_s22 + $0x4] sm:$0xf]  ;;  %v353_v18 = vld [vmem:[%s192_s22 + $0x8] sm:$0xf0] }
  0x13   : > { %258 = vmatpush.bf16.msra.mxu1 %v372_v10  ;;  %v352_v19 = vor.u32 %v379_v16, %v351_v15  ;;  %v356_v20 = vor.u32 %v378_v17, %v353_v18 }
  0x15   : > { %277 = vperm.xlu0 %394, %v274_v2  }
  0x16   : > { %246 = vmatpush.bf16.msra.mxu0 %v360_v13 }
  0x17   : > { %259 = vmatpush.bf16.msra.mxu1 %v364_v14 }
  0x1a   : > { %247 = vmatpush.bf16.msra.mxu0 %v352_v19 }
  0x1b   : > { %260 = vmatpush.bf16.msra.mxu1 %v356_v20 }
  0x1d   : > { %373 = vmatmul.msk.bf16.vlgmr.msra.gmra.mxu0 %vm236_vm0, %v199_v21 }
  0x1e   : > { %374 = vmatmul.msk.bf16.vlgmr.msra.gmra.mxu1 %vm236_vm0, %v199_v21 }
  0x7f   : > { %v270_v22 = vpop.permute.xlu0 %269 }
  0x87   : > { %v278_v26 = vpop.permute.xlu0 %277 }
  0x9a   : > { %v249_v23 = vpop.f32.mrf.mxu0 }
  0x9b   : > { %v272_v24 = vmul.f32 %v270_v22, %v249_v23  ;;  %v262_v25 = vpop.f32.mrf.mxu1 }
  0x9c   : > { %v273_v27 = vmul.f32 %v270_v22, %v262_v25 }
  0x9d   : > { %v280_v28 = vadd.f32 %v278_v26, %v272_v24 }
  0x9e   : > { %v281_v29 = vadd.f32 %v278_v26, %v273_v27 }
  0x9f   : > { %v282_v30 = vmax.f32 %v280_v28, 0.0 }
  0xa0   : > { %v283_v31 = vmax.f32 %v281_v29, 0.0 }
  0xa1   : > { %284 = vst [vmem:[%s197_s30] sm:$0xff] %v282_v30 }
  0xa2   : > { %285 = vst [vmem:[%s197_s30 + $0x8] sm:$0xff] %v283_v31  ;;  %v251_v32 = vpop.f32.mrf.mxu0 }
  0xa3   : > { %v264_v33 = vpop.f32.mrf.mxu1 }
  0xa4 PF: > { %s14_s15 = sadd.s32 1, %s401_s15  }
  0xa5   : > { %p11_p4 = scmp.ge.s32.totalorder %s14_s15, 4  }
  0xa7   :  { %13 = sbr.rel (!%p11_p4) target bundleno = 1 (0x1), region = 66 }

</bundles_post_ra>
